<compile_context>
chip_gen: v7x
topology: tpu7x:2x2x1
jax: 0.10.0
libtpu: 0.0.40
codegen_flags: <defaults>
</compile_context>

<pallas_src>
import functools

import jax
import jax.numpy as jnp
from jax.experimental import pallas as pl
from jax.experimental.pallas import tpu as pltpu

EPS = 1e-5

_PASS1_BLOCK_BYTES = 6 * 1024 * 1024   # review: 4-8 MiB; 6 MiB keeps 2x double-buffer v5e-safe
_PASS2_BLOCK_BYTES = 4 * 1024 * 1024
_PASS2_MAX_IMGS = 8                    # static unroll bound inside the normalize kernel
_FUSED_MAX_BYTES = 12 * 1024 * 1024    # single-pass path only when everything fits in VMEM
_FUSED_MAX_N = 64                      # static unroll bound for the fused output scatter
_VMEM_LIMIT = 48 * 1024 * 1024


# --------------------------------------------------------------------------------------
# small helpers
# --------------------------------------------------------------------------------------
def _ceil_to(x, m):
    return -(-x // m) * m


def _padded_tile_bytes(shape, dtype):
    """VMEM footprint of a block: lanes padded to 128, sublanes to 8*(4/itemsize)."""
    itemsize = jnp.dtype(dtype).itemsize
    sub = max(1, 32 // itemsize)
    if len(shape) == 1:
        return _ceil_to(shape[0], 128) * itemsize
    lead = 1
    for d in shape[:-2]:
        lead *= d
    return lead * _ceil_to(shape[-2], sub) * _ceil_to(shape[-1], 128) * itemsize


def _largest_divisor_not_above(n, cap):
    cap = max(1, min(n, cap))
    for d in range(cap, 0, -1):
        if n % d == 0:
            return d
    return 1


def _sel_matrix(w, w_out, dtype):
    """0/1 matrix that picks every other column: (x @ sel)[..., c] == x[..., 2c]."""
    r = jnp.arange(w, dtype=jnp.int32)[:, None]
    c = jnp.arange(w_out, dtype=jnp.int32)[None, :]
    return (r == 2 * c).astype(dtype)


def _fold_scale_shift(psum, psq, gamma, beta, inv_count):
    """Tiny O(C) wrapper math: fold partial sums into scale/shift (review: fold in wrapper)."""
    tot = jnp.sum(psum, axis=0)                      # (C, 1)
    totsq = jnp.sum(psq, axis=0)                     # (C, 1)
    mean = tot * inv_count
    var = jnp.maximum(totsq * inv_count - mean * mean, 0.0)
    inv = jax.lax.rsqrt(var + EPS)
    scale_c = gamma.reshape(-1, 1).astype(jnp.float32) * inv
    shift_c = beta.reshape(-1, 1).astype(jnp.float32) - mean * scale_c
    return scale_c, shift_c


# --------------------------------------------------------------------------------------
# Fused single-pass kernel (small activations): stats + normalize + pool + pad in one call
# --------------------------------------------------------------------------------------
def _fused_kernel(x_ref, gt_ref, gb_ref, gamma_ref, beta_ref, *rest, n_imgs, rows,
                  pad_rows, w_keep, w_out, pool, inv_count, mm_precision):
    """x_ref: (N*C*Heff, L) free view of NCHW (L = 2W when pooling, else W).
    gt_ref: (C, N*rows) channel-grouping matrix; gb_ref: (N*rows, C) broadcast-back matrix."""
    if pool:
        sel_ref, o_ref = rest
    else:
        (o_ref,) = rest

    xraw = x_ref[...]                                    # (NR, L) in input dtype
    xf = xraw.astype(jnp.float32)

    # per-channel stats via lane reduce + 0/1 grouping matmuls on the otherwise idle MXU
    srows = jnp.sum(xf, axis=1, keepdims=True)           # (NR, 1)
    sqrows = jnp.sum(xf * xf, axis=1, keepdims=True)     # (NR, 1)
    hi = jax.lax.Precision.HIGHEST
    ch_sum = jnp.dot(gt_ref[...], srows, preferred_element_type=jnp.float32, precision=hi)
    ch_sq = jnp.dot(gt_ref[...], sqrows, preferred_element_type=jnp.float32, precision=hi)
    mean = ch_sum * inv_count                            # (C, 1)
    var = jnp.maximum(ch_sq * inv_count - mean * mean, 0.0)
    inv = jax.lax.rsqrt(var + EPS)
    scale_c = gamma_ref[...] * inv                       # (C, 1)
    shift_c = beta_ref[...] - mean * scale_c             # (C, 1)
    # route per-channel scale/shift back to rows (0/1 matmul -> exact routing)
    scale_r = jnp.dot(gb_ref[...], scale_c, preferred_element_type=jnp.float32, precision=hi)
    shift_r = jnp.dot(gb_ref[...], shift_c, preferred_element_type=jnp.float32, precision=hi)

    if pool:
        # even-H rows are the first W lanes; even-W compaction via the 0/1 selection matmul
        xs = jnp.dot(xraw[:, :w_keep], sel_ref[...],
                     preferred_element_type=jnp.float32, precision=mm_precision)
    else:
        xs = xf
    y = xs * scale_r + shift_r                           # (NR, w_out)

    out_rows_img = rows + pad_rows
    if pad_rows > 0:
        zpad = jnp.zeros((pad_rows, w_out), o_ref.dtype)
    for n in range(n_imgs):                              # static unroll (gated to small N)
        base = n * out_rows_img
        o_ref[base:base + rows, :] = y[n * rows:(n + 1) * rows, :].astype(o_ref.dtype)
        if pad_rows > 0:
            o_ref[base + rows:base + out_rows_img, :] = zpad


def _bridge_fused(x, gamma, beta, pad, pool_flag, heff, w_out, rows, out_rows,
                  inv_count, sel_dtype, mm_precision):
    N, C, H, W = x.shape
    lane_in = 2 * W if pool_flag else W
    nr = N * rows
    xf = x.reshape(nr, lane_in)                          # free row-major view of NCHW

    ch_of_row = (jnp.arange(nr, dtype=jnp.int32) // heff) % C
    gb = (ch_of_row[:, None] == jnp.arange(C, dtype=jnp.int32)[None, :]).astype(jnp.float32)
    gt = gb.T
    gamma2 = gamma.reshape(C, 1).astype(jnp.float32)
    beta2 = beta.reshape(C, 1).astype(jnp.float32)

    args = [xf, gt, gb, gamma2, beta2]
    if pool_flag:
        args.append(_sel_matrix(W, w_out, sel_dtype))

    out_flat = pl.pallas_call(
        functools.partial(_fused_kernel, n_imgs=N, rows=rows, pad_rows=pad * heff,
                          w_keep=W, w_out=w_out, pool=pool_flag,
                          inv_count=inv_count, mm_precision=mm_precision),
        out_shape=jax.ShapeDtypeStruct((N * out_rows, w_out), x.dtype),
    )(*args)
    return out_flat.reshape(N, C + pad, heff, w_out)


# --------------------------------------------------------------------------------------
# Two-pass streaming path
# --------------------------------------------------------------------------------------
def _stats_kernel(x_ref, sum_ref, sq_ref, *, nb, n_total, need_mask):
    """x_ref: (nb, C, H*W) block.  Outputs per-block partial sum / sumsq as (1, C, 1)."""
    xb = x_ref[...].astype(jnp.float32)
    if need_mask:                                        # cdiv tail: zero out-of-range images
        valid = n_total - pl.program_id(0) * nb
        bidx = jax.lax.broadcasted_iota(jnp.int32, xb.shape, 0)
        xb = jnp.where(bidx < valid, xb, 0.0)
    ps = jnp.sum(xb, axis=2, keepdims=True)              # (nb, C, 1) lane reduce
    pq = jnp.sum(xb * xb, axis=2, keepdims=True)
    sum_ref[...] = jnp.sum(ps, axis=0, keepdims=True)    # (1, C, 1)
    sq_ref[...] = jnp.sum(pq, axis=0, keepdims=True)


def _normalize_kernel(x_ref, scale_ref, shift_ref, *rest, imgs, c_rows, w_keep,
                      w_out, pad_rows, pool, pre_sliced, mm_precision):
    """x_ref: (imgs, c_rows, lane_in).  scale/shift: (c_rows, 1).  sel (if pool): resident."""
    if pool:
        sel_ref, o_ref = rest
        sel = sel_ref[...]                               # hoisted: loaded once per step
    else:
        (o_ref,) = rest
    scale = scale_ref[...]
    shift = shift_ref[...]
    if pad_rows > 0:
        zpad = jnp.zeros((pad_rows, w_out), o_ref.dtype)
    for j in range(imgs):                                # static unroll (imgs <= 8)
        xfull = x_ref[j]                                 # (c_rows, lane_in)
        if pool:
            xe = xfull if pre_sliced else xfull[:, :w_keep]      # even-H rows
            xs = jnp.dot(xe, sel, preferred_element_type=jnp.float32,
                         precision=mm_precision)         # even-W compaction on the MXU
        else:
            xs = xfull.astype(jnp.float32)
        y = xs * scale + shift                           # 2 VALU ops / element
        o_ref[j, :c_rows, :] = y.astype(o_ref.dtype)
        if pad_rows > 0:
            o_ref[j, c_rows:c_rows + pad_rows, :] = zpad


def _bridge_two_pass(x, gamma, beta, pad, pool_flag, heff, w_out, rows, out_rows,
                     inv_count, sel_dtype, mm_precision):
    N, C, H, W = x.shape
    hw = H * W

    # ---------------- pass 1: streaming partial stats (parallel grid, masked cdiv tail) ----
    x_stats = x.reshape(N, C, hw)                        # free view
    per_n = _padded_tile_bytes((C, hw), x.dtype)
    # TODO(synk): if a single image's (C, H*W) block ever exceeds the budget, add an hw-block
    # grid axis; for CIFAR-scale bridges one image is far below 6 MiB.
    nb = max(1, min(N, _PASS1_BLOCK_BYTES // max(1, per_n)))
    gn = pl.cdiv(N, nb)
    need_mask = (N % nb) != 0

    psum, psq = pl.pallas_call(
        functools.partial(_stats_kernel, nb=nb, n_total=N, need_mask=need_mask),
        out_shape=(jax.ShapeDtypeStruct((gn, C, 1), jnp.float32),
                   jax.ShapeDtypeStruct((gn, C, 1), jnp.float32)),
        grid=(gn,),
        in_specs=[pl.BlockSpec((nb, C, hw), lambda i: (i, 0, 0))],
        out_specs=(pl.BlockSpec((1, C, 1), lambda i: (i, 0, 0)),
                   pl.BlockSpec((1, C, 1), lambda i: (i, 0, 0))),
        compiler_params=pltpu.CompilerParams(
            dimension_semantics=("parallel",),           # independent partials -> v7x megacore
            vmem_limit_bytes=_VMEM_LIMIT),
    )(x_stats)

    scale_c, shift_c = _fold_scale_shift(psum, psq, gamma, beta, inv_count)
    scale_rows = jnp.repeat(scale_c, heff, axis=0)       # (rows, 1)
    shift_rows = jnp.repeat(shift_c, heff, axis=0)

    # ---------------- pass 2: normalize + stride-2 subsample + zero-channel pad -------------
    pre_sliced = pool_flag and (W % 128 == 0)            # fetch only even-H lanes when aligned
    lane_view = 2 * W if pool_flag else W
    lane_in = W if (pre_sliced or not pool_flag) else 2 * W
    x_norm = x.reshape(N, rows, lane_view)               # free view

    per_img = (_padded_tile_bytes((rows, lane_in), x.dtype)
               + _padded_tile_bytes((out_rows, w_out), x.dtype))
    nb2 = _largest_divisor_not_above(
        N, min(_PASS2_MAX_IMGS, max(1, _PASS2_BLOCK_BYTES // max(1, per_img))))
    # TODO(synk): a single huge image block (very large C*Heff) would need a row-block grid axis.

    in_specs = [pl.BlockSpec((nb2, rows, lane_in), lambda n: (n, 0, 0)),
                pl.BlockSpec((rows, 1), lambda n: (0, 0)),
                pl.BlockSpec((rows, 1), lambda n: (0, 0))]
    args = [x_norm, scale_rows, shift_rows]
    if pool_flag:
        in_specs.append(pl.BlockSpec((W, w_out), lambda n: (0, 0)))   # resident sel matrix
        args.append(_sel_matrix(W, w_out, sel_dtype))

    out_flat = pl.pallas_call(
        functools.partial(_normalize_kernel, imgs=nb2, c_rows=rows, w_keep=W,
                          w_out=w_out, pad_rows=pad * heff, pool=pool_flag,
                          pre_sliced=pre_sliced, mm_precision=mm_precision),
        out_shape=jax.ShapeDtypeStruct((N, out_rows, w_out), x.dtype),
        grid=(N // nb2,),
        in_specs=in_specs,
        out_specs=pl.BlockSpec((nb2, out_rows, w_out), lambda n: (n, 0, 0)),
        compiler_params=pltpu.CompilerParams(
            dimension_semantics=("parallel",),
            vmem_limit_bytes=_VMEM_LIMIT),
    )(*args)

    return out_flat.reshape(N, C + pad, heff, w_out)


# --------------------------------------------------------------------------------------
# Public entry point
# --------------------------------------------------------------------------------------
def bridge_forward(x, gamma, beta, pad, pool_flag=True, force_two_pass=False):
    """Bridge forward: BatchNorm2d (batch stats) -> avg_pool2d(1, 2) -> zero-pad channels.
    x: (N, C, H, W).  gamma/beta: (C,).  Returns (N, C+pad, Ho, Wo)."""
    N, C, H, W = x.shape
    if pool_flag:
        # avg_pool2d(kernel=1, stride=2) == x[:, :, ::2, ::2]
        # TODO(synk): odd H/W would need ceil-sized outputs; the free (Ho, 2W) view assumes even dims.
        assert H % 2 == 0 and W % 2 == 0, "pooling path assumes even H, W"
        heff, w_out = H // 2, W // 2
    else:
        heff, w_out = H, W

    rows = C * heff
    out_rows = (C + pad) * heff
    inv_count = 1.0 / float(N * H * W)

    if x.dtype == jnp.bfloat16:
        # 0/1 selection is exact in bf16 when inputs are already bf16 (review item)
        sel_dtype, mm_precision = jnp.bfloat16, None
    else:
        sel_dtype, mm_precision = jnp.float32, jax.lax.Precision.HIGHEST

    fused_bytes = (_padded_tile_bytes((N * rows, 2 * W if pool_flag else W), x.dtype)
                   + _padded_tile_bytes((N * out_rows, w_out), x.dtype)
                   + _padded_tile_bytes((C, N * rows), jnp.float32)
                   + _padded_tile_bytes((N * rows, C), jnp.float32))
    use_fused = (not force_two_pass) and (N <= _FUSED_MAX_N) and (fused_bytes <= _FUSED_MAX_BYTES)

    if use_fused:
        return _bridge_fused(x, gamma, beta, pad, pool_flag, heff, w_out, rows,
                             out_rows, inv_count, sel_dtype, mm_precision)
    return _bridge_two_pass(x, gamma, beta, pad, pool_flag, heff, w_out, rows,
                            out_rows, inv_count, sel_dtype, mm_precision)


# --------------------------------------------------------------------------------------
# Pure-JAX reference (mirrors the PyTorch forward) and self-test
# --------------------------------------------------------------------------------------
def _reference(x, gamma, beta, pad, pool_flag=True):
    mean = jnp.mean(x, axis=(0, 2, 3), keepdims=True)
    var = jnp.mean((x - mean) ** 2, axis=(0, 2, 3), keepdims=True)
    y = (x - mean) * jax.lax.rsqrt(var + EPS)
    y = gamma.reshape(1, -1, 1, 1) * y + beta.reshape(1, -1, 1, 1)
    if pool_flag:
        y = y[:, :, ::2, ::2]
    n, _, ho, wo = y.shape
    z = jnp.zeros((n, pad, ho, wo), dtype=y.dtype)
    return jnp.concatenate([y, z], axis=1)


if __name__ == "__main__":
    key = jax.random.PRNGKey(0)
    N, C, H, W = 2, 4, 16, 16
    pad = 4

    kx, kg, kb = jax.random.split(key, 3)
    x = jax.random.normal(kx, (N, C, H, W), dtype=jnp.float32)

    gamma1 = jnp.ones((C,), dtype=jnp.float32)           # fresh nn.BatchNorm2d affine init
    beta1 = jnp.zeros((C,), dtype=jnp.float32)
    gamma2 = jax.random.normal(kg, (C,), dtype=jnp.float32)
    beta2 = jax.random.normal(kb, (C,), dtype=jnp.float32)

    fwd = jax.jit(bridge_forward, static_argnums=(3, 4, 5))

    def _check(out, ref, shape):
        assert out.shape == shape, out.shape
        assert jnp.allclose(out, ref, atol=2e-5, rtol=2e-5), float(jnp.max(jnp.abs(out - ref)))

    # Fused single-pass path (default for small activations), pooling on.
    out = jax.block_until_ready(fwd(x, gamma1, beta1, pad, True, False))
    _check(out, _reference(x, gamma1, beta1, pad, True), (N, C + pad, H // 2, W // 2))

    # Fused path, no pooling, non-trivial affine parameters.
    out = jax.block_until_ready(fwd(x, gamma2, beta2, pad, False, False))
    _check(out, _reference(x, gamma2, beta2, pad, False), (N, C + pad, H, W))

    # Force the streaming two-pass path (both pooling modes) so it is exercised too.
    out = jax.block_until_ready(fwd(x, gamma2, beta2, pad, True, True))
    _check(out, _reference(x, gamma2, beta2, pad, True), (N, C + pad, H // 2, W // 2))

    out = jax.block_until_ready(fwd(x, gamma1, beta1, pad, False, True))
    _check(out, _reference(x, gamma1, beta1, pad, False), (N, C + pad, H, W))

    print("KERNEL_OK")
</pallas_src>

<mosaic_0001>
module attributes {stable_mosaic.version = 11 : i64} {
  func.func @_fused_kernel(%arg0: memref<64x32xf32, #tpu.memory_space<vmem>>, %arg1: memref<4x64xf32, #tpu.memory_space<vmem>>, %arg2: memref<64x4xf32, #tpu.memory_space<vmem>>, %arg3: memref<4x1xf32, #tpu.memory_space<vmem>>, %arg4: memref<4x1xf32, #tpu.memory_space<vmem>>, %arg5: memref<16x8xf32, #tpu.memory_space<vmem>>, %arg6: memref<128x8xf32, #tpu.memory_space<vmem>>) attributes {dimension_semantics = [], scalar_prefetch = 0 : i64, scratch_operands = 0 : i64, tpu.core_type = #tpu.core_type<tc>} {
    %c0 = arith.constant 0 : index
    %c0_0 = arith.constant 0 : index
    %0 = vector.load %arg0[%c0, %c0_0] : memref<64x32xf32, #tpu.memory_space<vmem>>, vector<64x32xf32>
    %cst = arith.constant dense<0.000000e+00> : vector<64xf32>
    %1 = vector.multi_reduction <add>, %0, %cst [1] : vector<64x32xf32> to vector<64xf32>
    %2 = vector.shape_cast %1 : vector<64xf32> to vector<64x1xf32>
    %3 = arith.mulf %0, %0 : vector<64x32xf32>
    %cst_1 = arith.constant dense<0.000000e+00> : vector<64xf32>
    %4 = vector.multi_reduction <add>, %3, %cst_1 [1] : vector<64x32xf32> to vector<64xf32>
    %5 = vector.shape_cast %4 : vector<64xf32> to vector<64x1xf32>
    %c0_2 = arith.constant 0 : index
    %c0_3 = arith.constant 0 : index
    %6 = vector.load %arg1[%c0_2, %c0_3] : memref<4x64xf32, #tpu.memory_space<vmem>>, vector<4x64xf32>
    %cst_4 = arith.constant dense<0.000000e+00> : vector<4x1xf32>
    %7 = tpu.matmul %6, %2, %cst_4 {dimension_numbers = #tpu.dot_dimension_numbers<[1], [0], [0], [1], [0, 0, 1, 1], [], []>, precision = #tpu.contract_precision<fp32>} : vector<4x64xf32>, vector<64x1xf32>, vector<4x1xf32> -> vector<4x1xf32>
    %c0_5 = arith.constant 0 : index
    %c0_6 = arith.constant 0 : index
    %8 = vector.load %arg1[%c0_5, %c0_6] : memref<4x64xf32, #tpu.memory_space<vmem>>, vector<4x64xf32>
    %cst_7 = arith.constant dense<0.000000e+00> : vector<4x1xf32>
    %9 = tpu.matmul %8, %5, %cst_7 {dimension_numbers = #tpu.dot_dimension_numbers<[1], [0], [0], [1], [0, 0, 1, 1], [], []>, precision = #tpu.contract_precision<fp32>} : vector<4x64xf32>, vector<64x1xf32>, vector<4x1xf32> -> vector<4x1xf32>
    %cst_8 = arith.constant 0.001953125 : f32
    %10 = vector.broadcast %cst_8 : f32 to vector<4x1xf32>
    %11 = arith.mulf %7, %10 : vector<4x1xf32>
    %cst_9 = arith.constant 0.001953125 : f32
    %12 = vector.broadcast %cst_9 : f32 to vector<4x1xf32>
    %13 = arith.mulf %9, %12 : vector<4x1xf32>
    %14 = arith.mulf %11, %11 : vector<4x1xf32>
    %15 = arith.subf %13, %14 : vector<4x1xf32>
    %cst_10 = arith.constant 0.000000e+00 : f32
    %16 = vector.broadcast %cst_10 : f32 to vector<4x1xf32>
    %17 = arith.maximumf %15, %16 : vector<4x1xf32>
    %cst_11 = arith.constant 9.99999974E-6 : f32
    %18 = vector.broadcast %cst_11 : f32 to vector<4x1xf32>
    %19 = arith.addf %17, %18 : vector<4x1xf32>
    %20 = math.rsqrt %19 : vector<4x1xf32>
    %c0_12 = arith.constant 0 : index
    %c0_13 = arith.constant 0 : index
    %21 = vector.load %arg3[%c0_12, %c0_13] : memref<4x1xf32, #tpu.memory_space<vmem>>, vector<4x1xf32>
    %22 = arith.mulf %21, %20 : vector<4x1xf32>
    %c0_14 = arith.constant 0 : index
    %c0_15 = arith.constant 0 : index
    %23 = vector.load %arg4[%c0_14, %c0_15] : memref<4x1xf32, #tpu.memory_space<vmem>>, vector<4x1xf32>
    %24 = arith.mulf %11, %22 : vector<4x1xf32>
    %25 = arith.subf %23, %24 : vector<4x1xf32>
    %c0_16 = arith.constant 0 : index
    %c0_17 = arith.constant 0 : index
    %26 = vector.load %arg2[%c0_16, %c0_17] : memref<64x4xf32, #tpu.memory_space<vmem>>, vector<64x4xf32>
    %cst_18 = arith.constant dense<0.000000e+00> : vector<64x1xf32>
    %27 = tpu.matmul %26, %22, %cst_18 {dimension_numbers = #tpu.dot_dimension_numbers<[1], [0], [0], [1], [0, 0, 1, 1], [], []>, precision = #tpu.contract_precision<fp32>} : vector<64x4xf32>, vector<4x1xf32>, vector<64x1xf32> -> vector<64x1xf32>
    %c0_19 = arith.constant 0 : index
    %c0_20 = arith.constant 0 : index
    %28 = vector.load %arg2[%c0_19, %c0_20] : memref<64x4xf32, #tpu.memory_space<vmem>>, vector<64x4xf32>
    %cst_21 = arith.constant dense<0.000000e+00> : vector<64x1xf32>
    %29 = tpu.matmul %28, %25, %cst_21 {dimension_numbers = #tpu.dot_dimension_numbers<[1], [0], [0], [1], [0, 0, 1, 1], [], []>, precision = #tpu.contract_precision<fp32>} : vector<64x4xf32>, vector<4x1xf32>, vector<64x1xf32> -> vector<64x1xf32>
    %30 = vector.extract_strided_slice %0 {offsets = [0, 0], sizes = [64, 16], strides = [1, 1]} : vector<64x32xf32> to vector<64x16xf32>
    %c0_22 = arith.constant 0 : index
    %c0_23 = arith.constant 0 : index
    %31 = vector.load %arg5[%c0_22, %c0_23] : memref<16x8xf32, #tpu.memory_space<vmem>>, vector<16x8xf32>
    %cst_24 = arith.constant dense<0.000000e+00> : vector<64x8xf32>
    %32 = tpu.matmul %30, %31, %cst_24 {dimension_numbers = #tpu.dot_dimension_numbers<[1], [0], [0], [1], [0, 0, 1, 1], [], []>, precision = #tpu.contract_precision<fp32>} : vector<64x16xf32>, vector<16x8xf32>, vector<64x8xf32> -> vector<64x8xf32>
    %33 = vector.broadcast %27 : vector<64x1xf32> to vector<64x8xf32>
    %34 = arith.mulf %32, %33 : vector<64x8xf32>
    %35 = vector.broadcast %29 : vector<64x1xf32> to vector<64x8xf32>
    %36 = arith.addf %34, %35 : vector<64x8xf32>
    %cst_25 = arith.constant 0.000000e+00 : f32
    %37 = vector.broadcast %cst_25 : f32 to vector<32x8xf32>
    %38 = vector.extract_strided_slice %36 {offsets = [0, 0], sizes = [32, 8], strides = [1, 1]} : vector<64x8xf32> to vector<32x8xf32>
    %c0_26 = arith.constant 0 : index
    %c0_27 = arith.constant 0 : index
    %39 = vector.load %arg6[%c0_26, %c0_27] : memref<128x8xf32, #tpu.memory_space<vmem>>, vector<32x8xf32>
    tpu.vector_store %arg6[%c0_26, %c0_27], %38 {strides = array<i32>} : memref<128x8xf32, #tpu.memory_space<vmem>>, vector<32x8xf32>,
    %c32 = arith.constant 32 : index
    %c0_28 = arith.constant 0 : index
    %40 = vector.load %arg6[%c32, %c0_28] : memref<128x8xf32, #tpu.memory_space<vmem>>, vector<32x8xf32>
    tpu.vector_store %arg6[%c32, %c0_28], %37 {strides = array<i32>} : memref<128x8xf32, #tpu.memory_space<vmem>>, vector<32x8xf32>,
    %41 = vector.extract_strided_slice %36 {offsets = [32, 0], sizes = [32, 8], strides = [1, 1]} : vector<64x8xf32> to vector<32x8xf32>
    %c64 = arith.constant 64 : index
    %c0_29 = arith.constant 0 : index
    %42 = vector.load %arg6[%c64, %c0_29] : memref<128x8xf32, #tpu.memory_space<vmem>>, vector<32x8xf32>
    tpu.vector_store %arg6[%c64, %c0_29], %41 {strides = array<i32>} : memref<128x8xf32, #tpu.memory_space<vmem>>, vector<32x8xf32>,
    %c96 = arith.constant 96 : index
    %c0_30 = arith.constant 0 : index
    %43 = vector.load %arg6[%c96, %c0_30] : memref<128x8xf32, #tpu.memory_space<vmem>>, vector<32x8xf32>
    tpu.vector_store %arg6[%c96, %c0_30], %37 {strides = array<i32>} : memref<128x8xf32, #tpu.memory_space<vmem>>, vector<32x8xf32>,
    return
  }
}

</mosaic_0001>

<bundles_post_ra>
// kernel: bridge_forward.1
= control target key start
LH: loop header
LB: loop body
LE: loop exit
PB: predicated region body
PF: predicated region fallthrough
CT: control target
= control target key end

     0   :  { %vm32_vm0 = vcmask 261120   ;;  %s5504_s0 = inlined_call_operand.vmem [shape: f32[64,32], index: 0, kind: input, shape index: {}]   ;;  %s5505_s1 = inlined_call_operand.vmem [shape: f32[4,64], index: 1, kind: input, shape index: {}]   ;;  %s5506_s2 = inlined_call_operand.vmem [shape: f32[64,4], index: 2, kind: input, shape index: {}]   ;;  %s5507_s3 = inlined_call_operand.vmem [shape: f32[4,1], index: 3, kind: input, shape index: {}]   ;;  %s5508_s4 = inlined_call_operand.vmem [shape: f32[4,1], index: 4, kind: input, shape index: {}]   ;;  %s5509_s5 = inlined_call_operand.vmem [shape: f32[16,8], index: 5, kind: input, shape index: {}]   ;;  %s5510_s6 = inlined_call_operand.hbm [shape: f32[128,8], index: 6, kind: output, shape index: {}]  }
   0x1   :  { %v26_v0 = vld [vmem:[%s5504_s0 + $0x10] sm:$0xff]  ;;  %v4794_v1 = vld [vmem:[%s5504_s0] sm:$0xff]  ;;  %v27_v2 = vld [vmem:[%s5504_s0 + $0x18] sm:$0xff] }
   0x2   :  { %v39_v3 = vsel %vm32_vm0, %v26_v0, 0.0  ;;  %v33_v4 = vsel %vm32_vm0, %v4794_v1, 0.0  ;;  %v4805_v5 = vld [vmem:[%s5504_s0 + $0x8] sm:$0xff]  ;;  %v42_v6 = vsel %vm32_vm0, %v27_v2, 0.0  ;;  %v28_v9 = vld [vmem:[%s5504_s0 + $0x20] sm:$0xff] }
   0x3   :  { %40 = vadd.xlane.f32.xlu1 %v39_v3  ;;  %34 = vadd.xlane.f32.xlu0 %v33_v4  ;;  %v36_v7 = vsel %vm32_vm0, %v4805_v5, 0.0  ;;  %v29_v8 = vld [vmem:[%s5504_s0 + $0x28] sm:$0xff] }
   0x4   :  { %11 = vsyncpa [#allocation3], 0  ;;  %v48_v10 = vsel %vm32_vm0, %v29_v8, 0.0  ;;  %v45_v11 = vsel %vm32_vm0, %v28_v9, 0.0  ;;  %v31_v12 = vld [vmem:[%s5504_s0 + $0x38] sm:$0xff]  ;;  %v30_v13 = vld [vmem:[%s5504_s0 + $0x30] sm:$0xff]  ;;  %v58_v16 = vmul.f32 %v4805_v5, %v4805_v5  ;;  %v57_v17 = vmul.f32 %v4794_v1, %v4794_v1 }
   0x5   :  { %v54_v14 = vsel %vm32_vm0, %v31_v12, 0.0  ;;  %v51_v15 = vsel %vm32_vm0, %v30_v13, 0.0  ;;  %v60_v20 = vmul.f32 %v27_v2, %v27_v2  ;;  %v59_v21 = vmul.f32 %v26_v0, %v26_v0  ;;  %v89_v34 = vld [vmem:[%s5505_s1] sm:$0xf] }
   0x6   :  { %v68_v18 = vsel %vm32_vm0, %v58_v16, 0.0  ;;  %v65_v19 = vsel %vm32_vm0, %v57_v17, 0.0  ;;  %v62_v22 = vmul.f32 %v29_v8, %v29_v8  ;;  %v61_v25 = vmul.f32 %v28_v9, %v28_v9 }
   0x7   :  { %43 = vadd.xlane.f32.xlu1 %v42_v6  ;;  %37 = vadd.xlane.f32.xlu0 %v36_v7  ;;  %v74_v23 = vsel %vm32_vm0, %v60_v20, 0.0  ;;  %v71_v24 = vsel %vm32_vm0, %v59_v21, 0.0  ;;  %v64_v28 = vmul.f32 %v31_v12, %v31_v12  ;;  %v63_v29 = vmul.f32 %v30_v13, %v30_v13 }
   0x8   :  { %v80_v26 = vsel %vm32_vm0, %v62_v22, 0.0  ;;  %v77_v27 = vsel %vm32_vm0, %v61_v25, 0.0  ;;  %v4746_v30 = vmov 0.0|0.0   ;;  %vm4747_vm1 = vmmov 0  }
   0x9   :  { %4398 = vmatprep.subr.bf16.mxu1 %v4746_v30  ;;  %4434 = vmatprep.subr.bf16.mxu0 %v4746_v30  ;;  %v86_v31 = vsel %vm32_vm0, %v64_v28, 0.0  ;;  %v83_v32 = vsel %vm32_vm0, %v63_v29, 0.0  ;;  %v4748_v33 = vmov 0.0   ;;  %vm90_vm2 = vcmask 523264  }
   0xa   :  { %3922 = vmatprep.mubr.msk.f32.mxu1 %vm4747_vm1, %v4748_v33  ;;  %3979 = vmatprep.mubr.msk.f32.mxu0 %vm4747_vm1, %v4748_v33  ;;  %v92_v37 = vsel %vm90_vm2, %v89_v34, 0  ;;  %vm1188_vm3 = vcmask 31744   ;;  %vm1213_vm4 = vcmask 1043456   ;;  %vm2716_vm5 = vcmask 130048  }
   0xb   :  { %49 = vadd.xlane.f32.xlu1 %v48_v10  ;;  %46 = vadd.xlane.f32.xlu0 %v45_v11  ;;  %v4847_v41 = vand.u32 4294901760, %v92_v37  ;;  %vm3597_vm6 = vcmask 64512  }
   0xc   :  { %3602 = vst.msk [vmem:[#allocation2 + $0x20] sm:$0xff] %vm3597_vm6, %v4748_v33  ;;  %3603 = vst.msk [vmem:[#allocation2 + $0x28] sm:$0xff] %vm3597_vm6, %v4748_v33 }
   0xd   :  { %v4854_v49 = vsub.f32 %v92_v37, %v4847_v41  ;;  %3604 = vst.msk [vmem:[#allocation2 + $0x30] sm:$0xff] %vm3597_vm6, %v4748_v33  ;;  %3605 = vst.msk [vmem:[#allocation2 + $0x38] sm:$0xff] %vm3597_vm6, %v4748_v33 }
   0xe   :  { %3610 = vst.msk [vmem:[#allocation2 + $0x60] sm:$0xff] %vm3597_vm6, %v4748_v33  ;;  %3611 = vst.msk [vmem:[#allocation2 + $0x68] sm:$0xff] %vm3597_vm6, %v4748_v33 }
   0xf   :  { %55 = vadd.xlane.f32.xlu1 %v54_v14  ;;  %52 = vadd.xlane.f32.xlu0 %v51_v15  ;;  %v4870_v59 = vand.u32 4294901760, %v4854_v49  ;;  %3612 = vst.msk [vmem:[#allocation2 + $0x70] sm:$0xff] %vm3597_vm6, %v4748_v33  ;;  %3613 = vst.msk [vmem:[#allocation2 + $0x78] sm:$0xff] %vm3597_vm6, %v4748_v33 }
  0x11   :  { %v170_v7 = vsub.f32 %v4854_v49, %v4870_v59 }
  0x13   :  { %69 = vadd.xlane.f32.xlu1 %v68_v18  ;;  %66 = vadd.xlane.f32.xlu0 %v65_v19  ;;  %v4903_v17 = vand.u32 4294901760, %v170_v7 }
  0x17   :  { %75 = vadd.xlane.f32.xlu1 %v74_v23  ;;  %72 = vadd.xlane.f32.xlu0 %v71_v24 }
  0x1b   :  { %81 = vadd.xlane.f32.xlu1 %v80_v26  ;;  %78 = vadd.xlane.f32.xlu0 %v77_v27 }
  0x1f   :  { %87 = vadd.xlane.f32.xlu1 %v86_v31  ;;  %84 = vadd.xlane.f32.xlu0 %v83_v32 }
  0x90   :  { %v41_v35 = vpop.xlane.xlu1 %40  ;;  %v35_v36 = vpop.xlane.xlu0 %34 }
  0x91   :  { %v95_v42 = vand.u32 4294901760, %v35_v36  ;;  %v101_v48 = vand.u32 4294901760, %v41_v35 }
  0x93   :  { %v4856_v50 = vsub.f32 %v35_v36, %v95_v42  ;;  %v4867_v56 = vsub.f32 %v41_v35, %v101_v48 }
  0x94   :  { %v44_v38 = vpop.xlane.xlu1 %43  ;;  %v38_v39 = vpop.xlane.xlu0 %37 }
  0x95   :  { %v98_v40 = vand.u32 4294901760, %v38_v39  ;;  %v104_v43 = vand.u32 4294901760, %v44_v38  ;;  %v180_v60 = vand.u32 4294901760, %v4856_v50  ;;  %v194_v6 = vand.u32 4294901760, %v4867_v56 }
  0x97   :  { %v4849_v44 = vpack.c.bf16 %v98_v40, %v95_v42  ;;  %v4851_v45 = vsub.f32 %v38_v39, %v98_v40  ;;  %v4860_v51 = vsub.f32 %v44_v38, %v104_v43  ;;  %v4864_v53 = vpack.c.bf16 %v104_v43, %v101_v48 }
  0x98   :  { %v50_v46 = vpop.xlane.xlu1 %49  ;;  %v47_v47 = vpop.xlane.xlu0 %46  ;;  %v181_v8 = vsub.f32 %v4856_v50, %v180_v60  ;;  %v195_v16 = vsub.f32 %v4867_v56, %v194_v6 }
  0x99   :  { %4400 = vmatpush3.bf16.msra.mxu1 %v4849_v44  ;;  %4436 = vmatpush3.bf16.msra.mxu0 %v4849_v44  ;;  %v110_v52 = vand.u32 4294901760, %v50_v46  ;;  %v187_v54 = vand.u32 4294901760, %v4851_v45  ;;  %v107_v55 = vand.u32 4294901760, %v47_v47  ;;  %v201_v62 = vand.u32 4294901760, %v4860_v51 }
  0x9a   :  { %4401 = vmatprep.subr.bf16.mxu1 %v4746_v30  ;;  %4437 = vmatprep.subr.bf16.mxu0 %v4746_v30  ;;  %v182_v18 = vand.u32 4294901760, %v181_v8  ;;  %v196_v26 = vand.u32 4294901760, %v195_v16  ;;  %v4423_v42 = vpack.c.bf16 %v4851_v45, %v4856_v50 }
  0x9b   :  { %v4873_v61 = vpack.c.bf16 %v110_v52, %v107_v55  ;;  %v4878_v63 = vsub.f32 %v50_v46, %v110_v52  ;;  %v188_v0 = vsub.f32 %v4851_v45, %v187_v54  ;;  %v4883_v2 = vsub.f32 %v47_v47, %v107_v55 }
  0x9c   :  { %v56_v57 = vpop.xlane.xlu1 %55  ;;  %v53_v58 = vpop.xlane.xlu0 %52  ;;  %v202_v10 = vsub.f32 %v4860_v51, %v201_v62  ;;  %v4447_v21 = vpack.c.bf16 %v187_v54, %v180_v60  ;;  %v4450_v28 = vpack.c.bf16 %v201_v62, %v194_v6  ;;  %v4426_v47 = vpack.c.bf16 %v4860_v51, %v4867_v56 }
  0x9d   :  { %4403 = vmatpush3.bf16.msra.mxu1 %v4864_v53  ;;  %4439 = vmatpush3.bf16.msra.mxu0 %v4864_v53  ;;  %v116_v3 = vand.u32 4294901760, %v56_v57  ;;  %v113_v4 = vand.u32 4294901760, %v53_v58  ;;  %v215_v11 = vand.u32 4294901760, %v4878_v63  ;;  %v189_v12 = vand.u32 4294901760, %v188_v0 }
  0x9e   :  { %4404 = vmatprep.subr.bf16.mxu1 %v4746_v30  ;;  %4440 = vmatprep.subr.bf16.mxu0 %v4746_v30  ;;  %v208_v13 = vand.u32 4294901760, %v4883_v2  ;;  %v203_v19 = vand.u32 4294901760, %v202_v10 }
  0x9f   :  { %v4889_v9 = vpack.c.bf16 %v116_v3, %v113_v4  ;;  %v4898_v14 = vsub.f32 %v56_v57, %v116_v3  ;;  %v4900_v15 = vsub.f32 %v53_v58, %v113_v4  ;;  %v216_v20 = vsub.f32 %v4878_v63, %v215_v11 }
  0xa0   :  { %v209_v22 = vsub.f32 %v4883_v2, %v208_v13  ;;  %v4411_v25 = vpack.c.bf16 %v189_v12, %v182_v18  ;;  %v4414_v27 = vpack.c.bf16 %v203_v19, %v196_v26  ;;  %v4453_v38 = vpack.c.bf16 %v215_v11, %v208_v13  ;;  %v70_v43 = vpop.xlane.xlu1 %69  ;;  %v67_v46 = vpop.xlane.xlu0 %66 }
  0xa1   :  { %4406 = vmatpush3.bf16.msra.mxu1 %v4873_v61  ;;  %4442 = vmatpush3.bf16.msra.mxu0 %v4873_v61  ;;  %v229_v23 = vand.u32 4294901760, %v4898_v14  ;;  %v222_v24 = vand.u32 4294901760, %v4900_v15  ;;  %v217_v29 = vand.u32 4294901760, %v216_v20  ;;  %v635_v50 = vand.u32 4294901760, %v70_v43 }
  0xa2   :  { %4407 = vmatprep.subr.bf16.mxu1 %v4746_v30  ;;  %4443 = vmatprep.subr.bf16.mxu0 %v4746_v30  ;;  %v210_v31 = vand.u32 4294901760, %v209_v22  ;;  %v632_v51 = vand.u32 4294901760, %v67_v46  ;;  %v4432_v52 = vpack.c.bf16 %v4898_v14, %v4900_v15 }
  0xa3   :  { %v230_v32 = vsub.f32 %v4898_v14, %v229_v23  ;;  %v223_v34 = vsub.f32 %v4900_v15, %v222_v24  ;;  %v4456_v40 = vpack.c.bf16 %v229_v23, %v222_v24  ;;  %v4955_v54 = vsub.f32 %v70_v43, %v635_v50 }
  0xa4   :  { %v4417_v37 = vpack.c.bf16 %v217_v29, %v210_v31  ;;  %v76_v45 = vpop.xlane.xlu1 %75  ;;  %v73_v48 = vpop.xlane.xlu0 %72  ;;  %v4957_v55 = vsub.f32 %v67_v46, %v632_v51 }
  0xa5   :  { %4409 = vmatpush3.bf16.msra.mxu1 %v4889_v9  ;;  %4445 = vmatpush3.bf16.msra.mxu0 %v4889_v9  ;;  %v231_v35 = vand.u32 4294901760, %v230_v32  ;;  %v224_v36 = vand.u32 4294901760, %v223_v34  ;;  %v641_v56 = vand.u32 4294901760, %v76_v45  ;;  %v638_v57 = vand.u32 4294901760, %v73_v48 }
  0xa6   :  { %4410 = vmatprep.subr.bf16.mxu1 %v4746_v30  ;;  %4446 = vmatprep.subr.bf16.mxu0 %v4746_v30  ;;  %v724_v62 = vand.u32 4294901760, %v4955_v54 }
  0xa7   :  { %v4420_v39 = vpack.c.bf16 %v231_v35, %v224_v36  ;;  %v4969_v0 = vsub.f32 %v76_v45, %v641_v56 }
  0xa8   :  { %3923 = vmatmul.mubr.f32.vlgmr.msra.gmra.mrb[0].mxu1 %v4903_v17  ;;  %3980 = vmatmul.mubr.f32.vlgmr.msra.gmra.mrb[0].mxu0 %v4870_v59  ;;  %v82_v58 = vpop.xlane.xlu1 %81  ;;  %v79_v60 = vpop.xlane.xlu0 %78 }
  0xa9   :  { %4412 = vmatpush3.bf16.msra.mxu1 %v4411_v25  ;;  %4448 = vmatpush3.bf16.msra.mxu0 %v4447_v21  ;;  %v647_v3 = vand.u32 4294901760, %v82_v58  ;;  %v644_v4 = vand.u32 4294901760, %v79_v60  ;;  %v738_v11 = vand.u32 4294901760, %v4969_v0 }
  0xaa   :  { %4413 = vmatprep.subr.bf16.mxu1 %v4746_v30  ;;  %4449 = vmatprep.subr.bf16.mxu0 %v4746_v30 }
  0xab   :  { %3941 = vmatprep.mubr.msk.f32.mxu1 %vm4747_vm1, %v4748_v33  ;;  %3998 = vmatprep.mubr.msk.f32.mxu0 %vm4747_vm1, %v4748_v33  ;;  %v4974_v8 = vpack.c.bf16 %v647_v3, %v644_v4  ;;  %v4986_v13 = vsub.f32 %v82_v58, %v647_v3  ;;  %v4988_v14 = vsub.f32 %v79_v60, %v644_v4 }
  0xac   :  { %v88_v6 = vpop.xlane.xlu1 %87  ;;  %v85_v7 = vpop.xlane.xlu0 %84  ;;  %v739_v21 = vsub.f32 %v4969_v0, %v738_v11 }
  0xad   :  { %4415 = vmatpush3.bf16.msra.mxu1 %v4414_v27  ;;  %4451 = vmatpush3.bf16.msra.mxu0 %v4450_v28  ;;  %v653_v15 = vand.u32 4294901760, %v88_v6  ;;  %v650_v16 = vand.u32 4294901760, %v85_v7  ;;  %v752_v23 = vand.u32 4294901760, %v4986_v13  ;;  %v745_v24 = vand.u32 4294901760, %v4988_v14 }
  0xae   :  { %4416 = vmatprep.subr.bf16.mxu1 %v4746_v30  ;;  %4452 = vmatprep.subr.bf16.mxu0 %v4746_v30  ;;  %v740_v27 = vand.u32 4294901760, %v739_v21  ;;  %v4501_v45 = vpack.c.bf16 %v4986_v13, %v4988_v14 }
  0xaf   :  { %v4990_v18 = vpack.c.bf16 %v653_v15, %v650_v16  ;;  %v5002_v25 = vsub.f32 %v88_v6, %v653_v15  ;;  %v5004_v26 = vsub.f32 %v85_v7, %v650_v16  ;;  %v753_v31 = vsub.f32 %v4986_v13, %v752_v23  ;;  %v1181_v6 = vld [vmem:[%s5506_s2 + $0x8] sm:$0xff]  ;;  %v1182_v7 = vld [vmem:[%s5506_s2 + $0x10] sm:$0xff]  ;;  %v1184_v13 = vld [vmem:[%s5506_s2 + $0x20] sm:$0xff] }
  0xb0   :  { %v746_v32 = vsub.f32 %v4988_v14, %v745_v24 }
  0xb1   :  { %4418 = vmatpush3.bf16.msra.mxu1 %v4417_v37  ;;  %4454 = vmatpush3.bf16.msra.mxu0 %v4453_v38  ;;  %v766_v34 = vand.u32 4294901760, %v5002_v25  ;;  %v759_v35 = vand.u32 4294901760, %v5004_v26  ;;  %v754_v37 = vand.u32 4294901760, %v753_v31 }
  0xb2   :  { %4419 = vmatprep.subr.bf16.mxu1 %v4746_v30  ;;  %4455 = vmatprep.subr.bf16.mxu0 %v4746_v30  ;;  %v747_v38 = vand.u32 4294901760, %v746_v32 }
  0xb4   :  { %v4489_v46 = vpack.c.bf16 %v754_v37, %v747_v38  ;;  %v1175_v38 = vld [vmem:[%s5507_s3] sm:$0xf] }
  0xb5   :  { %4421 = vmatpush3.bf16.msra.mxu1 %v4420_v39  ;;  %4457 = vmatpush3.bf16.msra.mxu0 %v4456_v40  ;;  %v767_v39 = vsub.f32 %v5002_v25, %v766_v34  ;;  %v760_v40 = vsub.f32 %v5004_v26, %v759_v35 }
  0xb6   :  { %4422 = vmatprep.subr.bf16.mxu1 %v4746_v30  ;;  %4458 = vmatprep.subr.bf16.mxu0 %v4746_v30 }
  0xb7   :  { %v761_v43 = vand.u32 4294901760, %v760_v40 }
  0xb8   :  { %3942 = vmatmul.mubr.f32.vlgmr.msra.gmra.mrb[0].mxu1 %v4847_v41  ;;  %3999 = vmatmul.mubr.f32.vlgmr.msra.gmra.mrb[0].mxu0 %v4847_v41 }
  0xb9   :  { %4424 = vmatpush3.bf16.msra.mxu1 %v4423_v42  ;;  %4460 = vmatpush3.bf16.msra.mxu0 %v4849_v44  ;;  %v4429_v44 = vpack.c.bf16 %v4878_v63, %v4883_v2  ;;  %v717_v63 = vand.u32 4294901760, %v4957_v55  ;;  %v4971_v2 = vsub.f32 %v73_v48, %v638_v57  ;;  %v768_v42 = vand.u32 4294901760, %v767_v39 }
  0xba   :  { %4425 = vmatprep.subr.bf16.mxu1 %v4746_v30  ;;  %4461 = vmatprep.subr.bf16.mxu0 %v4746_v30  ;;  %v4504_v48 = vpack.c.bf16 %v5002_v25, %v5004_v26 }
  0xbb   :  { %3960 = vmatprep.mubr.msk.f32.mxu1 %vm4747_vm1, %v4748_v33  ;;  %4017 = vmatprep.mubr.msk.f32.mxu0 %vm4747_vm1, %v4748_v33  ;;  %v718_v10 = vsub.f32 %v4957_v55, %v717_v63  ;;  %v731_v12 = vand.u32 4294901760, %v4971_v2 }
  0xbd   :  { %4427 = vmatpush3.bf16.msra.mxu1 %v4426_v47  ;;  %4463 = vmatpush3.bf16.msra.mxu0 %v4864_v53  ;;  %v4952_v53 = vpack.c.bf16 %v635_v50, %v632_v51  ;;  %v719_v20 = vand.u32 4294901760, %v718_v10  ;;  %v732_v22 = vsub.f32 %v4971_v2, %v731_v12  ;;  %v4495_v47 = vpack.c.bf16 %v4955_v54, %v4957_v55  ;;  %v1183_v10 = vld [vmem:[%s5506_s2 + $0x18] sm:$0xff] }
  0xbe   :  { %4428 = vmatprep.subr.bf16.mxu1 %v4746_v30  ;;  %4464 = vmatprep.subr.bf16.mxu0 %v4746_v30  ;;  %v4522_v50 = vpack.c.bf16 %v738_v11, %v731_v12  ;;  %v4525_v51 = vpack.c.bf16 %v752_v23, %v745_v24  ;;  %v1196_v12 = vsel %vm1188_vm3, %v1182_v7, 0  ;;  %v1199_v16 = vsel %vm1188_vm3, %v1183_v10, 0 }
  0xbf   :  { %v733_v28 = vand.u32 4294901760, %v732_v22  ;;  %v5118_v21 = vand.u32 4294901760, %v1199_v16  ;;  %v1186_v22 = vld [vmem:[%s5506_s2 + $0x30] sm:$0xff] }
  0xc1   :  { %4430 = vmatpush3.bf16.msra.mxu1 %v4429_v44  ;;  %4466 = vmatpush3.bf16.msra.mxu0 %v4873_v61  ;;  %v4962_v61 = vpack.c.bf16 %v641_v56, %v638_v57  ;;  %v4486_v36 = vpack.c.bf16 %v740_v27, %v733_v28  ;;  %v4498_v44 = vpack.c.bf16 %v4969_v0, %v4971_v2  ;;  %v1208_v27 = vsel %vm1188_vm3, %v1186_v22, 0  ;;  %v1187_v28 = vld [vmem:[%s5506_s2 + $0x38] sm:$0xff] }
  0xc2   :  { %4431 = vmatprep.subr.bf16.mxu1 %v4746_v30  ;;  %4467 = vmatprep.subr.bf16.mxu0 %v4746_v30  ;;  %v1211_v37 = vsel %vm1188_vm3, %v1187_v28, 0 }
  0xc5   :  { %4433 = vmatpush3.bf16.msra.mxu1 %v4432_v52  ;;  %4469 = vmatpush3.bf16.msra.mxu0 %v4889_v9  ;;  %v725_v9 = vsub.f32 %v4955_v54, %v724_v62  ;;  %v1180_v52 = vld [vmem:[%s5506_s2] sm:$0xff] }
  0xc6   :  { %4470 = vmatprep.subr.bf16.mxu1 %v4746_v30 }
  0xc7   :  { %v726_v19 = vand.u32 4294901760, %v725_v9  ;;  %v1193_v9 = vsel %vm1188_vm3, %v1181_v6, 0 }
  0xc8   :  { %3961 = vmatmul.mubr.f32.vlgmr.msra.gmra.mrb[0].mxu1 %v4854_v49  ;;  %4018 = vmatmul.mubr.f32.vlgmr.msra.gmra.mrb[0].mxu0 %v4847_v41  ;;  %v5109_v15 = vand.u32 4294901760, %v1193_v9 }
  0xc9   :  { %4472 = vmatpush3.bf16.msra.mxu1 %v4952_v53  ;;  %4036 = vmatprep.mubr.msk.f32.mxu1 %vm4747_vm1, %v4748_v33  ;;  %v4483_v29 = vpack.c.bf16 %v726_v19, %v719_v20  ;;  %v1202_v19 = vsel %vm1188_vm3, %v1184_v13, 0  ;;  %v1185_v20 = vld [vmem:[%s5506_s2 + $0x28] sm:$0xff] }
  0xca   :  { %4473 = vmatprep.subr.bf16.mxu1 %v4746_v30  ;;  %v5124_v23 = vsub.f32 %v1193_v9, %v5109_v15  ;;  %v5129_v25 = vand.u32 4294901760, %v1202_v19  ;;  %v1205_v26 = vsel %vm1188_vm3, %v1185_v20, 0 }
  0xcb   :  { %v5142_v32 = vand.u32 4294901760, %v1205_v26 }
  0xcc   :  { %v5140_v31 = vand.u32 4294901760, %v5124_v23 }
  0xcd   :  { %4475 = vmatpush3.bf16.msra.mxu1 %v4962_v61 }
  0xce   :  { %4476 = vmatprep.subr.bf16.mxu1 %v4746_v30 }
  0xd1   :  { %4478 = vmatpush3.bf16.msra.mxu1 %v4974_v8 }
  0xd2   :  { %4479 = vmatprep.subr.bf16.mxu1 %v4746_v30 }
  0xd5   :  { %4481 = vmatpush3.bf16.msra.mxu1 %v4990_v18 }
  0xd6   :  { %4482 = vmatprep.subr.bf16.mxu1 %v4746_v30 }
  0xd8   :  { %4037 = vmatmul.mubr.f32.vlgmr.msra.gmra.mrb[2].mxu1 %v4903_v17  ;;  %v4492_v17 = vpack.c.bf16 %v768_v42, %v761_v43  ;;  %v1296_v42 = vsub.f32 %v5124_v23, %v5140_v31  ;;  %v5162_v43 = vsub.f32 %v1205_v26, %v5142_v32 }
  0xd9   :  { %4484 = vmatpush3.bf16.msra.mxu1 %v4483_v29  ;;  %4055 = vmatprep.mubr.msk.f32.mxu1 %vm4747_vm1, %v4748_v33  ;;  %v5137_v29 = vsub.f32 %v1199_v16, %v5118_v21 }
  0xda   :  { %4485 = vmatprep.subr.bf16.mxu1 %v4746_v30 }
  0xdb   :  { %v5157_v39 = vand.u32 4294901760, %v5137_v29 }
  0xdd   :  { %4487 = vmatpush3.bf16.msra.mxu1 %v4486_v36  ;;  %v5150_v36 = vand.u32 4294901760, %v1208_v27 }
  0xde   :  { %4488 = vmatprep.subr.bf16.mxu1 %v4746_v30 }
  0xe1   :  { %4490 = vmatpush3.bf16.msra.mxu1 %v4489_v46  ;;  %v5164_v46 = vand.u32 4294901760, %v1211_v37 }
  0xe2   :  { %4491 = vmatprep.subr.bf16.mxu1 %v4746_v30 }
  0xe5   :  { %4493 = vmatpush3.bf16.msra.mxu1 %v4492_v17 }
  0xe6   :  { %4494 = vmatprep.subr.bf16.mxu1 %v4746_v30 }
  0xe8   :  { %4056 = vmatmul.mubr.f32.vlgmr.msra.gmra.mrb[2].mxu1 %v4847_v41 }
  0xe9   :  { %4496 = vmatpush3.bf16.msra.mxu1 %v4495_v47  ;;  %4074 = vmatprep.mubr.msk.f32.mxu1 %vm4747_vm1, %v4748_v33 }
  0xea   :  { %4497 = vmatprep.subr.bf16.mxu1 %v4746_v30 }
  0xed   :  { %4499 = vmatpush3.bf16.msra.mxu1 %v4498_v44 }
  0xee   :  { %4500 = vmatprep.subr.bf16.mxu1 %v4746_v30 }
  0xf1   :  { %4502 = vmatpush3.bf16.msra.mxu1 %v4501_v45  ;;  %v5172_v45 = vsub.f32 %v1208_v27, %v5150_v36 }
  0xf2   :  { %4503 = vmatprep.subr.bf16.mxu1 %v4746_v30 }
  0xf5   :  { %4505 = vmatpush3.bf16.msra.mxu1 %v4504_v48  ;;  %v1177_v48 = vld [vmem:[%s5508_s4] sm:$0xf] }
  0xf6   :  { %4506 = vmatprep.subr.bf16.mxu1 %v4746_v30 }
  0xf8   :  { %4075 = vmatmul.mubr.f32.vlgmr.msra.gmra.mrb[2].mxu1 %v4854_v49  ;;  %v4519_v49 = vpack.c.bf16 %v724_v62, %v717_v63 }
  0xf9   :  { %4508 = vmatpush3.bf16.msra.mxu1 %v4952_v53  ;;  %4093 = vmatprep.mubr.msk.f32.mxu1 %vm4747_vm1, %v4748_v33 }
  0xfa   :  { %4509 = vmatprep.subr.bf16.mxu1 %v4746_v30 }
  0xfd   :  { %4511 = vmatpush3.bf16.msra.mxu1 %v4962_v61 }
  0xfe   :  { %4512 = vmatprep.subr.bf16.mxu1 %v4746_v30 }
 0x101   :  { %4514 = vmatpush3.bf16.msra.mxu1 %v4974_v8 }
 0x102   :  { %4515 = vmatprep.subr.bf16.mxu1 %v4746_v30 }
 0x105   :  { %4517 = vmatpush3.bf16.msra.mxu1 %v4990_v18 }
 0x106   :  { %4518 = vmatprep.subr.bf16.mxu1 %v4746_v30 }
 0x108   :  { %4094 = vmatmul.mubr.f32.vlgmr.msra.gmra.mrb[2].mxu1 %v4870_v59  ;;  %v4528_v59 = vpack.c.bf16 %v766_v34, %v759_v35  ;;  %v5148_v35 = vsub.f32 %v1202_v19, %v5129_v25 }
 0x109   :  { %4520 = vmatpush3.bf16.msra.mxu1 %v4519_v49  ;;  %4112 = vmatprep.mubr.msk.f32.mxu1 %vm4747_vm1, %v4748_v33 }
 0x10a   :  { %4521 = vmatprep.subr.bf16.mxu1 %v4746_v30  ;;  %v5169_v44 = vand.u32 4294901760, %v5148_v35 }
 0x10d   :  { %4523 = vmatpush3.bf16.msra.mxu1 %v4522_v50 }
 0x10e   :  { %4524 = vmatprep.subr.bf16.mxu1 %v4746_v30 }
 0x111   :  { %4526 = vmatpush3.bf16.msra.mxu1 %v4525_v51  ;;  %v1316_v51 = vsub.f32 %v5137_v29, %v5157_v39 }
 0x112   :  { %4527 = vmatprep.subr.bf16.mxu1 %v4746_v30 }
 0x115   :  { %4529 = vmatpush3.bf16.msra.mxu1 %v4528_v59 }
 0x116   :  { %4530 = vmatprep.subr.bf16.mxu1 %v4746_v30 }
 0x118   :  { %4113 = vmatmul.mubr.f32.vlgmr.msra.gmra.mrb[2].mxu1 %v4847_v41 }
 0x119   :  { %4532 = vmatpush3.bf16.msra.mxu1 %v4952_v53  ;;  %4131 = vmatprep.mubr.msk.f32.mxu1 %vm4747_vm1, %v4748_v33  ;;  %v1190_v53 = vsel %vm1188_vm3, %v1180_v52, 0  ;;  %v1297_v52 = vand.u32 4294901760, %v1296_v42 }
 0x11a   :  { %4533 = vmatprep.subr.bf16.mxu1 %v4746_v30  ;;  %v5085_v54 = vand.u32 4294901760, %v1190_v53 }
 0x11c   :  { %v5088_v55 = vsub.f32 %v1190_v53, %v5085_v54  ;;  %v5183_v53 = vand.u32 4294901760, %v5162_v43 }
 0x11d   :  { %4535 = vmatpush3.bf16.msra.mxu1 %v4962_v61 }
 0x11e   :  { %4536 = vmatprep.subr.bf16.mxu1 %v4746_v30  ;;  %v5091_v56 = vand.u32 4294901760, %v5088_v55 }
 0x121   :  { %4538 = vmatpush3.bf16.msra.mxu1 %v4974_v8 }
 0x122   :  { %4539 = vmatprep.subr.bf16.mxu1 %v4746_v30  ;;  %v1286_v30 = vsub.f32 %v5088_v55, %v5091_v56 }
 0x124   :  { %v1287_v57 = vand.u32 4294901760, %v1286_v30  ;;  %v5186_v30 = vsub.f32 %v1211_v37, %v5164_v46 }
 0x125   :  { %4541 = vmatpush3.bf16.msra.mxu1 %v4990_v18  ;;  %v5112_v18 = vand.u32 4294901760, %v1196_v12 }
 0x126   :  { %4136 = vmatprep.mubr.f32.mxu0 %v1287_v57 }
 0x127   :  { %v5127_v24 = vsub.f32 %v1196_v12, %v5112_v18 }
 0x128   :  { %4132 = vmatmul.mubr.f32.vlgmr.msra.gmra.mrb[2].mxu1 %v4847_v41 }
 0x129   :  { %4220 = vmatprep.mubr.f32.mxu1 %v1287_v57  ;;  %v5145_v34 = vand.u32 4294901760, %v5127_v24 }
 0x12b   :  { %v1306_v47 = vsub.f32 %v5127_v24, %v5145_v34 }
 0x19b   :  { %v372_v41 = vpop.f32.mrb[0].mxu1  ;;  %v627_v58 = vpop.f32.mrb[0].mxu0 }
 0x19c   :  { %v4566_v60 = vadd.f32 %v627_v58, %v372_v41  ;;  %v3962_v61 = vpop.f32.mrb[1].mxu1  ;;  %v4019_v62 = vpop.f32.mrb[1].mxu0  ;;  %v1307_v41 = vand.u32 4294901760, %v1306_v47  ;;  %v1326_v58 = vsub.f32 %v5148_v35, %v5169_v44 }
 0x19e   :  { %v1168_v63 = vmul.f32 0.001953125, %v4566_v60  ;;  %v5191_v60 = vand.u32 4294901760, %v5172_v45  ;;  %v1327_v6 = vand.u32 4294901760, %v1326_v58  ;;  %v4720_v58 = vld [vmem:[%s5504_s0 + $0x30] sm:$0xff] }
 0x1a0   :  { %v1170_v2 = vmul.f32 %v1168_v63, %v1168_v63  ;;  %v1346_v7 = vsub.f32 %v5172_v45, %v5191_v60 }
 0x1fb   :  { %v1164_v0 = vpop.f32.mrb[2].mxu1 }
 0x1fc   :  { %v1169_v3 = vmul.f32 0.001953125, %v1164_v0  ;;  %v4133_v4 = vpop.f32.mrb[3].mxu1 }
 0x1fd   :  { %v5204_v4 = vand.u32 4294901760, %v5186_v30 }
 0x1fe   :  { %v1171_v8 = vsub.f32 %v1169_v3, %v1170_v2  ;;  %v1336_v3 = vsub.f32 %v5162_v43, %v5183_v53 }
 0x1ff   :  { %v1356_v13 = vsub.f32 %v5186_v30, %v5204_v4 }
 0x200   :  { %v1172_v11 = vmax.f32 %v1171_v8, 0.0 }
 0x201   :  { %v1357_v20 = vand.u32 4294901760, %v1356_v13 }
 0x202   :  { %v1173_v14 = vadd.f32 1e-05, %v1172_v11  ;;  %v1337_v11 = vand.u32 4294901760, %v1336_v3 }
 0x204   :  { %4714 = vrsqrt.f32 %v1173_v14  ;;  %v1347_v14 = vand.u32 4294901760, %v1346_v7 }
 0x20e   :  { %v4715_v40 = vpop.eup %4714 }
 0x20f   :  { %v1176_v17 = vmul.f32 %v4715_v40, %v1175_v38 }
 0x211   :  { %v1178_v49 = vmul.f32 %v1176_v17, %v1168_v63  ;;  %v1215_v50 = vsel %vm1213_vm4, %v1176_v17, 0  ;;  %v1317_v63 = vand.u32 4294901760, %v1316_v51 }
 0x212   :  { %v5180_v59 = vand.u32 4294901760, %v1215_v50 }
 0x213   :  { %v1179_v57 = vsub.f32 %v1177_v48, %v1178_v49  ;;  %v4718_v48 = vld [vmem:[%s5504_s0 + $0x20] sm:$0xff] }
 0x214   :  { %4134 = vmatprep.subr.mxu0 %v5180_v59  ;;  %v1365_v61 = vsub.f32 %v1215_v50, %v5180_v59  ;;  %v2730_v49 = vsel %vm2716_vm5, %v4718_v48, 0 }
 0x215   :  { %v1965_v62 = vsel %vm1213_vm4, %v1179_v57, 0  ;;  %4135 = vmatpush3.msra.mxu0 %v5180_v59  ;;  %v5352_v57 = vand.u32 4294901760, %v2730_v49 }
 0x216   :  { %v5197_v0 = vand.u32 4294901760, %v1965_v62  ;;  %4137 = vmatmul.mubr.f32.vlgmr.msra.gmra.mrb[2].mxu0 %v1297_v52  ;;  %v5199_v2 = vand.u32 4294901760, %v1365_v61 }
 0x217   :  { %4139 = vmatprep.mubr.f32.mxu0 %v1307_v41 }
 0x218   :  { %4218 = vmatprep.subr.mxu1 %v5197_v0  ;;  %v1367_v8 = vsub.f32 %v1365_v61, %v5199_v2  ;;  %v2115_v9 = vsub.f32 %v1965_v62, %v5197_v0 }
 0x219   :  { %4219 = vmatpush3.msra.mxu1 %v5197_v0 }
 0x21a   :  { %4140 = vmatmul.mubr.f32.gmra.mrb[4].mxu0 %v1317_v63  ;;  %4221 = vmatmul.mubr.f32.vlgmr.msra.gmra.mrb[4].mxu1 %v1297_v52  ;;  %v1368_v10 = vand.u32 4294901760, %v1367_v8  ;;  %v5212_v12 = vand.u32 4294901760, %v2115_v9 }
 0x21b   :  { %4142 = vmatprep.mubr.f32.mxu0 %v1327_v6  ;;  %4223 = vmatprep.mubr.f32.mxu1 %v1307_v41 }
 0x21c   :  { %4148 = vmatprep.subr.mxu0 %v1368_v10  ;;  %v2117_v16 = vsub.f32 %v2115_v9, %v5212_v12 }
 0x21d   :  { %4149 = vmatpush3.msra.mxu0 %v1368_v10 }
 0x21e   :  { %4143 = vmatmul.mubr.f32.gmra.mrb[6].mxu0 %v1337_v11  ;;  %4162 = vmatprep.subr.mxu0 %v1365_v61  ;;  %v2118_v19 = vand.u32 4294901760, %v2117_v16 }
 0x21f   :  { %4224 = vmatmul.mubr.f32.gmra.mrb[6].mxu1 %v1317_v63  ;;  %4145 = vmatprep.mubr.f32.mxu0 %v1347_v14 }
 0x220   :  { %4232 = vmatprep.subr.mxu1 %v2118_v19  ;;  %4226 = vmatprep.mubr.f32.mxu1 %v1327_v6 }
 0x221   :  { %4233 = vmatpush3.msra.mxu1 %v2118_v19 }
 0x222   :  { %4146 = vmatmul.mubr.f32.gmra.mrb[8].mxu0 %v1357_v20  ;;  %4246 = vmatprep.subr.mxu1 %v2115_v9 }
 0x223   :  { %4227 = vmatmul.mubr.f32.gmra.mrb[8].mxu1 %v1337_v11  ;;  %4150 = vmatprep.mubr.f32.mxu0 %v5085_v54 }
 0x224   :  { %4229 = vmatprep.mubr.f32.mxu1 %v1347_v14 }
 0x226   :  { %4151 = vmatmul.mubr.f32.vlgmr.msra.gmra.mrb[2].mxu0 %v5109_v15 }
 0x227   :  { %4163 = vmatpush3.msra.mxu0 %v1365_v61  ;;  %4230 = vmatmul.mubr.f32.gmra.mrb[10].mxu1 %v1357_v20 }
 0x228   :  { %4176 = vmatprep.subr.mxu0 %v5180_v59  ;;  %4153 = vmatprep.mubr.f32.mxu0 %v5112_v18 }
 0x229   :  { %4234 = vmatprep.mubr.f32.mxu1 %v5085_v54 }
 0x22a   :  { %4154 = vmatmul.mubr.f32.gmra.mrb[4].mxu0 %v5118_v21 }
 0x22b   :  { %4235 = vmatmul.mubr.f32.vlgmr.msra.gmra.mrb[4].mxu1 %v5109_v15  ;;  %4156 = vmatprep.mubr.f32.mxu0 %v5129_v25 }
 0x22c   :  { %4247 = vmatpush3.msra.mxu1 %v2115_v9  ;;  %4237 = vmatprep.mubr.f32.mxu1 %v5112_v18 }
 0x22d   :  { %4260 = vmatprep.subr.mxu1 %v5197_v0 }
 0x22e   :  { %4157 = vmatmul.mubr.f32.gmra.mrb[6].mxu0 %v5142_v32 }
 0x22f   :  { %4238 = vmatmul.mubr.f32.gmra.mrb[6].mxu1 %v5118_v21  ;;  %4159 = vmatprep.mubr.f32.mxu0 %v5150_v36 }
 0x230   :  { %4240 = vmatprep.mubr.f32.mxu1 %v5129_v25 }
 0x232   :  { %4160 = vmatmul.mubr.f32.gmra.mrb[8].mxu0 %v5164_v46 }
 0x233   :  { %4241 = vmatmul.mubr.f32.gmra.mrb[8].mxu1 %v5142_v32  ;;  %4164 = vmatprep.mubr.f32.mxu0 %v5088_v55 }
 0x234   :  { %4243 = vmatprep.mubr.f32.mxu1 %v5150_v36 }
 0x236   :  { %4165 = vmatmul.mubr.f32.vlgmr.msra.gmra.mrb[2].mxu0 %v5124_v23 }
 0x237   :  { %4177 = vmatpush3.msra.mxu0 %v5180_v59  ;;  %4244 = vmatmul.mubr.f32.gmra.mrb[10].mxu1 %v5164_v46 }
 0x238   :  { %4190 = vmatprep.subr.mxu0 %v5199_v2  ;;  %4167 = vmatprep.mubr.f32.mxu0 %v5127_v24 }
 0x239   :  { %4248 = vmatprep.mubr.f32.mxu1 %v5088_v55  ;;  %v2714_v55 = vld [vmem:[%s5509_s5] sm:$0xff] }
 0x23a   :  { %4168 = vmatmul.mubr.f32.gmra.mrb[4].mxu0 %v5137_v29  ;;  %v2742_v22 = vand.u32 4294901760, %v2714_v55 }
 0x23b   :  { %4249 = vmatmul.mubr.f32.vlgmr.msra.gmra.mrb[4].mxu1 %v5124_v23  ;;  %4170 = vmatprep.mubr.f32.mxu0 %v5148_v35 }
 0x23c   :  { %4261 = vmatpush3.msra.mxu1 %v5197_v0  ;;  %4251 = vmatprep.mubr.f32.mxu1 %v5127_v24  ;;  %v4749_v24 = vmov 0   ;;  %v5283_v27 = vsub.f32 %v2714_v55, %v2742_v22 }
 0x23d   :  { %4274 = vmatprep.subr.mxu1 %v5212_v12  ;;  %4712 = vset.pattern.permute.xlu1 %v4749_v24 }
 0x23e   :  { %4171 = vmatmul.mubr.f32.gmra.mrb[6].mxu0 %v5162_v43  ;;  %4713 = vset.pattern.permute.xlu0 %v4749_v24 }
 0x23f   :  { %4252 = vmatmul.mubr.f32.gmra.mrb[6].mxu1 %v5137_v29  ;;  %4173 = vmatprep.mubr.f32.mxu0 %v5172_v45  ;;  %v2891_v29 = vand.u32 4294901760, %v5283_v27 }
 0x240   :  { %4254 = vmatprep.mubr.f32.mxu1 %v5148_v35 }
 0x241   :  { %v2892_v35 = vsub.f32 %v5283_v27, %v2891_v29 }
 0x242   :  { %4174 = vmatmul.mubr.f32.gmra.mrb[8].mxu0 %v5186_v30 }
 0x243   :  { %4255 = vmatmul.mubr.f32.gmra.mrb[8].mxu1 %v5162_v43  ;;  %4178 = vmatprep.mubr.f32.mxu0 %v5091_v56  ;;  %v2893_v42 = vand.u32 4294901760, %v2892_v35 }
 0x244   :  { %4257 = vmatprep.mubr.f32.mxu1 %v5172_v45 }
 0x246   :  { %4179 = vmatmul.mubr.f32.vlgmr.msra.gmra.mrb[2].mxu0 %v5140_v31 }
 0x247   :  { %4191 = vmatpush3.msra.mxu0 %v5199_v2  ;;  %4258 = vmatmul.mubr.f32.gmra.mrb[10].mxu1 %v5186_v30 }
 0x248   :  { %4204 = vmatprep.subr.mxu0 %v5180_v59  ;;  %4181 = vmatprep.mubr.f32.mxu0 %v5145_v34 }
 0x249   :  { %4262 = vmatprep.mubr.f32.mxu1 %v5091_v56  ;;  %v2715_v56 = vld [vmem:[%s5509_s5 + $0x8] sm:$0xff] }
 0x24a   :  { %4182 = vmatmul.mubr.f32.gmra.mrb[4].mxu0 %v5157_v39  ;;  %v2745_v23 = vand.u32 4294901760, %v2715_v56 }
 0x24b   :  { %4263 = vmatmul.mubr.f32.vlgmr.msra.gmra.mrb[4].mxu1 %v5140_v31  ;;  %4184 = vmatprep.mubr.f32.mxu0 %v5169_v44 }
 0x24c   :  { %4275 = vmatpush3.msra.mxu1 %v5212_v12  ;;  %4265 = vmatprep.mubr.f32.mxu1 %v5145_v34  ;;  %v5281_v26 = vpack.c.bf16 %v2745_v23, %v2742_v22  ;;  %v5285_v28 = vsub.f32 %v2715_v56, %v2745_v23  ;;  %v2718_v34 = vsel %vm2716_vm5, %v4794_v1, 0  ;;  %v4716_v1 = vld [vmem:[%s5504_s0 + $0x10] sm:$0xff] }
 0x24d   :  { %4288 = vmatprep.subr.mxu1 %v5197_v0  ;;  %v5309_v38 = vand.u32 4294901760, %v2718_v34  ;;  %v2724_v40 = vsel %vm2716_vm5, %v4716_v1, 0 }
 0x24e   :  { %4185 = vmatmul.mubr.f32.gmra.mrb[6].mxu0 %v5183_v53  ;;  %v2898_v31 = vand.u32 4294901760, %v5285_v28  ;;  %v5323_v47 = vand.u32 4294901760, %v2724_v40 }
 0x24f   :  { %4266 = vmatmul.mubr.f32.gmra.mrb[6].mxu1 %v5157_v39  ;;  %4187 = vmatprep.mubr.f32.mxu0 %v5191_v60  ;;  %v2721_v39 = vsel %vm2716_vm5, %v4805_v5, 0  ;;  %v5326_v5 = vsub.f32 %v2718_v34, %v5309_v38 }
 0x250   :  { %4268 = vmatprep.mubr.f32.mxu1 %v5169_v44  ;;  %v2899_v37 = vsub.f32 %v5285_v28, %v2898_v31  ;;  %v5320_v17 = vand.u32 4294901760, %v2721_v39  ;;  %v4717_v44 = vld [vmem:[%s5504_s0 + $0x18] sm:$0xff]  ;;  %v5346_v52 = vsub.f32 %v2724_v40, %v5323_v47 }
 0x251   :  { %v2727_v45 = vsel %vm2716_vm5, %v4717_v44, 0  ;;  %v2810_v41 = vand.u32 4294901760, %v5326_v5 }
 0x252   :  { %4188 = vmatmul.mubr.f32.gmra.mrb[8].mxu0 %v5204_v4  ;;  %v2900_v43 = vand.u32 4294901760, %v2899_v37  ;;  %v5339_v51 = vand.u32 4294901760, %v2727_v45  ;;  %v2830_v6 = vand.u32 4294901760, %v5346_v52 }
 0x253   :  { %4269 = vmatmul.mubr.f32.gmra.mrb[8].mxu1 %v5183_v53  ;;  %4192 = vmatprep.mubr.f32.mxu0 %v5085_v54  ;;  %v4719_v53 = vld [vmem:[%s5504_s0 + $0x28] sm:$0xff] }
 0x254   :  { %4271 = vmatprep.mubr.f32.mxu1 %v5191_v60  ;;  %v4546_v50 = vpack.c.bf16 %v2900_v43, %v2893_v42  ;;  %v2733_v30 = vsel %vm2716_vm5, %v4719_v53, 0  ;;  %v2736_v60 = vsel %vm2716_vm5, %v4720_v58, 0  ;;  %v5364_v61 = vsub.f32 %v2727_v45, %v5339_v51 }
 0x255   :  { %v5367_v63 = vand.u32 4294901760, %v2733_v30  ;;  %v5377_v3 = vand.u32 4294901760, %v2736_v60  ;;  %v2831_v11 = vsub.f32 %v5346_v52, %v2830_v6 }
 0x256   :  { %4193 = vmatmul.mubr.f32.vlgmr.msra.gmra.mrb[2].mxu0 %v5109_v15 }
 0x257   :  { %4205 = vmatpush3.msra.mxu0 %v5180_v59  ;;  %4272 = vmatmul.mubr.f32.gmra.mrb[10].mxu1 %v5204_v4  ;;  %v5342_v59 = vsub.f32 %v2721_v39, %v5320_v17  ;;  %v2811_v4 = vsub.f32 %v5326_v5, %v2810_v41  ;;  %v5390_v8 = vsub.f32 %v2733_v30, %v5367_v63  ;;  %v2832_v19 = vand.u32 4294901760, %v2831_v11 }
 0x258   :  { %4195 = vmatprep.mubr.f32.mxu0 %v5112_v18  ;;  %4276 = vmatprep.mubr.f32.mxu1 %v5085_v54  ;;  %v5397_v10 = vsub.f32 %v2736_v60, %v5377_v3 }
 0x259   :  { %4543 = vmatprep.subr.bf16.mxu0 %v5281_v26  ;;  %v2820_v62 = vand.u32 4294901760, %v5342_v59  ;;  %v2860_v16 = vand.u32 4294901760, %v5390_v8 }
 0x25a   :  { %4196 = vmatmul.mubr.f32.gmra.mrb[4].mxu0 %v5118_v21  ;;  %v2870_v55 = vand.u32 4294901760, %v5397_v10 }
 0x25b   :  { %4277 = vmatmul.mubr.f32.vlgmr.msra.gmra.mrb[4].mxu1 %v5109_v15  ;;  %4198 = vmatprep.mubr.f32.mxu0 %v5129_v25  ;;  %v2821_v7 = vsub.f32 %v5342_v59, %v2820_v62  ;;  %v2861_v22 = vsub.f32 %v5390_v8, %v2860_v16 }
 0x25c   :  { %4289 = vmatpush3.msra.mxu1 %v5197_v0  ;;  %4279 = vmatprep.mubr.f32.mxu1 %v5112_v18  ;;  %v4721_v0 = vld [vmem:[%s5504_s0 + $0x38] sm:$0xff]  ;;  %v2871_v24 = vsub.f32 %v5397_v10, %v2870_v55  ;;  %s4750_s0 = smov [#allocation2]  }
 0x25d   :  { %v2739_v2 = vsel %vm2716_vm5, %v4721_v0, 0  ;;  %v2822_v13 = vand.u32 4294901760, %v2821_v7  ;;  %v2862_v34 = vand.u32 4294901760, %v2861_v22  ;;  %s3619_s21 = sshll.u32 %s4750_s0, 4  ;;  %s3620_s21 = int_to_ptr.vmem [resolvable:$true] %s3619_s21 }
 0x25e   :  { %4199 = vmatmul.mubr.f32.gmra.mrb[6].mxu0 %v5142_v32  ;;  %v5392_v9 = vand.u32 4294901760, %v2739_v2  ;;  %s4722_s22 = scalar_lea.vmem %s3620_s21, 2048  ;;  %p4727_p1 = scmp.lt.s32.totalorder %s3620_s21, %s3620_s21 }
 0x25f   :  { %4280 = vmatmul.mubr.f32.gmra.mrb[6].mxu1 %v5118_v21  ;;  %4201 = vmatprep.mubr.f32.mxu0 %v5150_v36  ;;  %p4723_p0 = scmp.ne.s32.totalorder %s3620_s21, %s4722_s22  ;;  %p4728_p2 = scmp.lt.s32.totalorder %s4722_s22, %s4722_s22 }
 0x260   :  { %4282 = vmatprep.mubr.f32.mxu1 %v5129_v25  ;;  %v2879_v14 = vsub.f32 %v2739_v2, %v5392_v9 }
 0x261   :  { %p4729_p3 = por %p4728_p2, %p4727_p1 }
 0x262   :  { %4202 = vmatmul.mubr.f32.gmra.mrb[8].mxu0 %v5164_v46  ;;  %v2880_v23 = vand.u32 4294901760, %v2879_v14 }
 0x263   :  { %4283 = vmatmul.mubr.f32.gmra.mrb[8].mxu1 %v5142_v32  ;;  %4206 = vmatprep.mubr.f32.mxu0 %v5085_v54  ;;  %p4730_p4 = pnand %p4729_p3, %p4723_p0 }
 0x264   :  { %4285 = vmatprep.mubr.f32.mxu1 %v5150_v36  ;;  %v2881_v35 = vsub.f32 %v2879_v14, %v2880_v23 }
 0x266   :  { %4207 = vmatmul.mubr.f32.vlgmr.msra.gmra.mrb[2].mxu0 %v5109_v15  ;;  %v2882_v37 = vand.u32 4294901760, %v2881_v35 }
 0x267   :  { %4286 = vmatmul.mubr.f32.gmra.mrb[10].mxu1 %v5164_v46  ;;  %4209 = vmatprep.mubr.f32.mxu0 %v5112_v18 }
 0x268   :  { %4290 = vmatprep.mubr.f32.mxu1 %v5085_v54  ;;  %4545 = vmatpush3.bf16.msra.mxu0 %v5281_v26  ;;  %v5375_v54 = vsub.f32 %v2730_v49, %v5352_v57 }
 0x269   :  { %4547 = vmatprep.subr.bf16.mxu0 %v4546_v50 }
 0x26a   :  { %4210 = vmatmul.mubr.f32.gmra.mrb[4].mxu0 %v5118_v21  ;;  %v2850_v12 = vand.u32 4294901760, %v5375_v54 }
 0x26b   :  { %4291 = vmatmul.mubr.f32.vlgmr.msra.gmra.mrb[4].mxu1 %v5109_v15  ;;  %4212 = vmatprep.mubr.f32.mxu0 %v5129_v25  ;;  %v2840_v15 = vand.u32 4294901760, %v5364_v61 }
 0x26c   :  { %4293 = vmatprep.mubr.f32.mxu1 %v5112_v18  ;;  %v2812_v18 = vand.u32 4294901760, %v2811_v4  ;;  %v2851_v20 = vsub.f32 %v5375_v54, %v2850_v12 }
 0x26e   :  { %4213 = vmatmul.mubr.f32.gmra.mrb[6].mxu0 %v5142_v32 }
 0x26f   :  { %4294 = vmatmul.mubr.f32.gmra.mrb[6].mxu1 %v5118_v21  ;;  %4215 = vmatprep.mubr.f32.mxu0 %v5150_v36  ;;  %v2841_v21 = vsub.f32 %v5364_v61, %v2840_v15 }
 0x270   :  { %4296 = vmatprep.mubr.f32.mxu1 %v5129_v25  ;;  %v4550_v25 = vpack.c.bf16 %v5285_v28, %v5283_v27 }
 0x271   :  { %v2842_v56 = vand.u32 4294901760, %v2841_v21 }
 0x272   :  { %4216 = vmatmul.mubr.f32.gmra.mrb[8].mxu0 %v5164_v46 }
 0x273   :  { %4297 = vmatmul.mubr.f32.gmra.mrb[8].mxu1 %v5142_v32  ;;  %4306 = vmatprep.mubr.f32.mxu0 %v2812_v18  ;;  %v2852_v32 = vand.u32 4294901760, %v2851_v20 }
 0x274   :  { %4299 = vmatprep.mubr.f32.mxu1 %v5150_v36  ;;  %v2872_v36 = vand.u32 4294901760, %v2871_v24 }
 0x276   :  { %4307 = vmatmul.mubr.f32.vlgmr.msra.gmra.mrb[10].mxu0 %v2822_v13 }
 0x277   :  { %4300 = vmatmul.mubr.f32.gmra.mrb[10].mxu1 %v5164_v46  ;;  %4309 = vmatprep.mubr.f32.mxu0 %v2832_v19  ;;  %v4558_v46 = vpack.c.bf16 %v2898_v31, %v2891_v29 }
 0x278   :  { %4549 = vmatpush3.bf16.msra.mxu0 %v4546_v50 }
 0x279   :  { %4551 = vmatprep.subr.bf16.mxu0 %v4550_v25 }
 0x27a   :  { %4310 = vmatmul.mubr.f32.gmra.mrb[12].mxu0 %v2842_v56 }
 0x27b   :  { %4312 = vmatprep.mubr.f32.mxu0 %v2852_v32 }
 0x27e   :  { %4313 = vmatmul.mubr.f32.gmra.mrb[14].mxu0 %v2862_v34 }
 0x27f   :  { %4315 = vmatprep.mubr.f32.mxu0 %v2872_v36 }
 0x282   :  { %4316 = vmatmul.mubr.f32.gmra.mrb[16].mxu0 %v2882_v37 }
 0x283   :  { %4322 = vmatprep.mubr.f32.mxu0 %v5309_v38 }
 0x286   :  { %4323 = vmatmul.mubr.f32.vlgmr.msra.gmra.mrb[10].mxu0 %v5320_v17 }
 0x287   :  { %4325 = vmatprep.mubr.f32.mxu0 %v5323_v47  ;;  %4553 = vmatpush3.bf16.msra.mxu0 %v4550_v25 }
 0x288   :  { %4555 = vmatprep.subr.bf16.mxu0 %v5281_v26 }
 0x28a   :  { %4326 = vmatmul.mubr.f32.gmra.mrb[12].mxu0 %v5339_v51 }
 0x28b   :  { %4328 = vmatprep.mubr.f32.mxu0 %v5352_v57 }
 0x28e   :  { %4329 = vmatmul.mubr.f32.gmra.mrb[14].mxu0 %v5367_v63 }
 0x28f   :  { %4331 = vmatprep.mubr.f32.mxu0 %v5377_v3 }
 0x292   :  { %4332 = vmatmul.mubr.f32.gmra.mrb[16].mxu0 %v5392_v9 }
 0x293   :  { %4338 = vmatprep.mubr.f32.mxu0 %v5326_v5 }
 0x296   :  { %4339 = vmatmul.mubr.f32.vlgmr.msra.gmra.mrb[10].mxu0 %v5342_v59 }
 0x297   :  { %4341 = vmatprep.mubr.f32.mxu0 %v5346_v52  ;;  %4557 = vmatpush3.bf16.msra.mxu0 %v5281_v26 }
 0x298   :  { %4559 = vmatprep.subr.bf16.mxu0 %v4558_v46 }
 0x29a   :  { %4342 = vmatmul.mubr.f32.gmra.mrb[12].mxu0 %v5364_v61 }
 0x29b   :  { %4344 = vmatprep.mubr.f32.mxu0 %v5375_v54 }
 0x29e   :  { %4345 = vmatmul.mubr.f32.gmra.mrb[14].mxu0 %v5390_v8 }
 0x29f   :  { %4347 = vmatprep.mubr.f32.mxu0 %v5397_v10 }
 0x2a2   :  { %4348 = vmatmul.mubr.f32.gmra.mrb[16].mxu0 %v2879_v14 }
 0x2a3   :  { %4354 = vmatprep.mubr.f32.mxu0 %v2810_v41 }
 0x2a6   :  { %4355 = vmatmul.mubr.f32.vlgmr.msra.gmra.mrb[10].mxu0 %v2820_v62 }
 0x2a7   :  { %4357 = vmatprep.mubr.f32.mxu0 %v2830_v6  ;;  %4561 = vmatpush3.bf16.msra.mxu0 %v4558_v46 }
 0x2a8   :  { %4563 = vmatprep.subr.bf16.mxu0 %v5281_v26 }
 0x2aa   :  { %4358 = vmatmul.mubr.f32.gmra.mrb[12].mxu0 %v2840_v15 }
 0x2ab   :  { %4360 = vmatprep.mubr.f32.mxu0 %v2850_v12 }
 0x2ae   :  { %4361 = vmatmul.mubr.f32.gmra.mrb[14].mxu0 %v2860_v16 }
 0x2af   :  { %4363 = vmatprep.mubr.f32.mxu0 %v2870_v55 }
 0x2b2   :  { %4364 = vmatmul.mubr.f32.gmra.mrb[16].mxu0 %v2880_v23 }
 0x2b3   :  { %4370 = vmatprep.mubr.f32.mxu0 %v5309_v38 }
 0x2b6   :  { %4371 = vmatmul.mubr.f32.vlgmr.msra.gmra.mrb[10].mxu0 %v5320_v17 }
 0x2b7   :  { %4373 = vmatprep.mubr.f32.mxu0 %v5323_v47  ;;  %4565 = vmatpush3.bf16.msra.mxu0 %v5281_v26 }
 0x2ba   :  { %4374 = vmatmul.mubr.f32.gmra.mrb[12].mxu0 %v5339_v51 }
 0x2bb   :  { %4376 = vmatprep.mubr.f32.mxu0 %v5352_v57 }
 0x2be   :  { %4377 = vmatmul.mubr.f32.gmra.mrb[14].mxu0 %v5367_v63 }
 0x2bf   :  { %4379 = vmatprep.mubr.f32.mxu0 %v5377_v3 }
 0x2c2   :  { %4380 = vmatmul.mubr.f32.gmra.mrb[16].mxu0 %v5392_v9 }
 0x2c3   :  { %4386 = vmatprep.mubr.f32.mxu0 %v5309_v38 }
 0x2c6   :  { %4387 = vmatmul.mubr.f32.vlgmr.msra.gmra.mrb[10].mxu0 %v5320_v17 }
 0x2c7   :  { %4389 = vmatprep.mubr.f32.mxu0 %v5323_v47 }
 0x2ca   :  { %4390 = vmatmul.mubr.f32.gmra.mrb[12].mxu0 %v5339_v51 }
 0x2cb   :  { %4392 = vmatprep.mubr.f32.mxu0 %v5352_v57 }
 0x2ce   :  { %4393 = vmatmul.mubr.f32.gmra.mrb[14].mxu0 %v5367_v63 }
 0x2cf   :  { %4395 = vmatprep.mubr.f32.mxu0 %v5377_v3 }
 0x2d2   :  { %4396 = vmatmul.mubr.f32.gmra.mrb[16].mxu0 %v5392_v9 }
 0x339   :  { %v4208_v26 = vpop.f32.mrb[2].mxu0 }
 0x33a   :  { %3508 = vperm.xlu1 %4712, %v4208_v26   ;;  %v1918_v27 = vpop.f32.mrb[3].mxu0 }
 0x33b   :  { %3503 = vperm.xlu0 %4713, %v1918_v27  }
 0x33d   :  { %v4211_v28 = vpop.f32.mrb[4].mxu0 }
 0x33e   :  { %v4292_v29 = vpop.f32.mrb[4].mxu1  ;;  %3518 = vperm.xlu1 %4712, %v4211_v28   ;;  %v1930_v31 = vpop.f32.mrb[5].mxu0 }
 0x33f   :  { %v2668_v38 = vpop.f32.mrb[5].mxu1  ;;  %3556 = vperm.xlu0 %4713, %v4292_v29  }
 0x341   :  { %v4214_v39 = vpop.f32.mrb[6].mxu0 }
 0x342   :  { %v4295_v1 = vpop.f32.mrb[6].mxu1  ;;  %3513 = vperm.xlu1 %4712, %v1930_v31   ;;  %v1942_v40 = vpop.f32.mrb[7].mxu0 }
 0x343   :  { %v2680_v42 = vpop.f32.mrb[7].mxu1  ;;  %3566 = vperm.xlu0 %4713, %v4295_v1  }
 0x345   :  { %v4217_v43 = vpop.f32.mrb[8].mxu0 }
 0x346   :  { %v4298_v17 = vpop.f32.mrb[8].mxu1  ;;  %v1954_v47 = vpop.f32.mrb[9].mxu0  ;;  %3551 = vperm.xlu1 %4712, %v2668_v38  }
 0x347   :  { %v2692_v5 = vpop.f32.mrb[9].mxu1  ;;  %3576 = vperm.xlu0 %4713, %v4298_v17  }
 0x34a   :  { %v4301_v44 = vpop.f32.mrb[10].mxu1  ;;  %3528 = vperm.xlu1 %4712, %v4214_v39  }
 0x34b   :  { %v2704_v45 = vpop.f32.mrb[11].mxu1  ;;  %3586 = vperm.xlu0 %4713, %v4301_v44  }
 0x34e   :  { %3523 = vperm.xlu1 %4712, %v1942_v40  }
 0x352   :  { %3561 = vperm.xlu1 %4712, %v2680_v42  }
 0x356   :  { %3538 = vperm.xlu1 %4712, %v4217_v43  }
 0x35a   :  { %3533 = vperm.xlu1 %4712, %v1954_v47  }
 0x35e   :  { %3571 = vperm.xlu1 %4712, %v2692_v5  }
 0x362   :  { %3581 = vperm.xlu1 %4712, %v2704_v45  }
 0x399   :  { %v4388_v33 = vpop.f32.mrb[10].mxu0 }
 0x39a   :  { %v3455_v48 = vpop.f32.mrb[11].mxu0 }
 0x39d   :  { %v4391_v49 = vpop.f32.mrb[12].mxu0 }
 0x39e   :  { %v3467_v50 = vpop.f32.mrb[13].mxu0 }
 0x3a1   :  { %v4394_v51 = vpop.f32.mrb[14].mxu0 }
 0x3a2   :  { %v3479_v59 = vpop.f32.mrb[15].mxu0 }
 0x3a5   :  { %v4397_v52 = vpop.f32.mrb[16].mxu0 }
 0x3a6   :  { %v3491_v53 = vpop.f32.mrb[17].mxu0 }
 0x3b9   :  { %v3509_v30 = vpop.permute.xlu1 %3508 }
 0x3ba   :  { %v3504_v57 = vpop.permute.xlu0 %3503  ;;  %v3542_v41 = vmul.f32 %v4388_v33, %v3509_v30 }
 0x3bb   :  { %v3541_v54 = vmul.f32 %v3504_v57, %v3455_v48 }
 0x3bd   :  { %v3519_v58 = vpop.permute.xlu1 %3518 }
 0x3be   :  { %v3557_v60 = vpop.permute.xlu0 %3556  ;;  %v3544_v62 = vmul.f32 %v4391_v49, %v3519_v58 }
 0x3bf   :  { %v3590_v61 = vadd.f32 %v3557_v60, %v3542_v41 }
 0x3c1   :  { %3599 = vst.msk [vmem:[#allocation2 + $0x8] sm:$0xff] %vm3597_vm6, %v3590_v61  ;;  %v3514_v63 = vpop.permute.xlu1 %3513 }
 0x3c2   :  { %v3567_v0 = vpop.permute.xlu0 %3566  ;;  %v3543_v10 = vmul.f32 %v3514_v63, %v3467_v50 }
 0x3c3   :  { %v3592_v2 = vadd.f32 %v3567_v0, %v3544_v62 }
 0x3c5   :  { %3601 = vst.msk [vmem:[#allocation2 + $0x18] sm:$0xff] %vm3597_vm6, %v3592_v2  ;;  %v3552_v3 = vpop.permute.xlu1 %3551 }
 0x3c6   :  { %v3589_v4 = vadd.f32 %v3552_v3, %v3541_v54  ;;  %v3577_v8 = vpop.permute.xlu0 %3576 }
 0x3c8   :  { %3598 = vst.msk [vmem:[#allocation2] sm:$0xff] %vm3597_vm6, %v3589_v4 }
 0x3c9   :  { %v3529_v6 = vpop.permute.xlu1 %3528 }
 0x3ca   :  { %v3546_v7 = vmul.f32 %v4394_v51, %v3529_v6  ;;  %v3587_v14 = vpop.permute.xlu0 %3586 }
 0x3cc   :  { %v3594_v9 = vadd.f32 %v3577_v8, %v3546_v7 }
 0x3cd   :  { %v3524_v15 = vpop.permute.xlu1 %3523 }
 0x3ce   :  { %3607 = vst.msk [vmem:[#allocation2 + $0x48] sm:$0xff] %vm3597_vm6, %v3594_v9  ;;  %v3545_v19 = vmul.f32 %v3524_v15, %v3479_v59 }
 0x3d1   :  { %v3562_v18 = vpop.permute.xlu1 %3561 }
 0x3d2   :  { %v3591_v11 = vadd.f32 %v3562_v18, %v3543_v10 }
 0x3d4   :  { %3600 = vst.msk [vmem:[#allocation2 + $0x10] sm:$0xff] %vm3597_vm6, %v3591_v11 }
 0x3d5   :  { %v3539_v12 = vpop.permute.xlu1 %3538 }
 0x3d6   :  { %v3548_v13 = vmul.f32 %v4397_v52, %v3539_v12 }
 0x3d8   :  { %v3596_v21 = vadd.f32 %v3587_v14, %v3548_v13 }
 0x3d9   :  { %v3534_v16 = vpop.permute.xlu1 %3533 }
 0x3da   :  { %3609 = vst.msk [vmem:[#allocation2 + $0x58] sm:$0xff] %vm3597_vm6, %v3596_v21  ;;  %v3547_v25 = vmul.f32 %v3534_v16, %v3491_v53 }
 0x3dd   :  { %v3572_v20 = vpop.permute.xlu1 %3571 }
 0x3de   :  { %v3593_v55 = vadd.f32 %v3572_v20, %v3545_v19 }
 0x3e0   :  { %3606 = vst.msk [vmem:[#allocation2 + $0x40] sm:$0xff] %vm3597_vm6, %v3593_v55 }
 0x3e1   :  { %v3582_v56 = vpop.permute.xlu1 %3581 }
 0x3e2   :  { %v3595_v22 = vadd.f32 %v3582_v56, %v3547_v25 }
 0x3e4   :  { %3608 = vst.msk [vmem:[#allocation2 + $0x50] sm:$0xff] %vm3597_vm6, %v3595_v22 }
 0x3e5   :  { %4733 = shalt.err (!%p4730_p4)
}
 0x3e6   :  { %s4734_s25 = scalar_lea.hbm %s5510_s6, 2048 }
 0x3e7   :  { %p4735_p5 = scmp.ne.s32.totalorder %s5510_s6, %s4734_s25  ;;  %p4738_p6 = scmp.lt.u32.totalorder %s4734_s25, %s5510_s6 }
 0x3e9   :  { %p4740_p7 = pnand %p4738_p6, %p4735_p5 }
 0x3eb   :  { %4743 = shalt.err (!%p4740_p7)
}
 0x3ec   :  { %s4751_s30 = smov 128   ;;  %s4752_s2 = smov 8  }
 0x3ed   :  { %3625 = dma.vmem_to_hbm [thread:$0]  %s3620_s21, 2048, %s5510_s6, [#allocation3], %s4751_s30, %s4751_s30, %s4752_s2  }
 0x3ee   :  { %4744 = dma.done.wait [#allocation3], 2048  }
 0x3ef   :  { %4745 = vsyncadd [#allocation3], 4294965248 }
 0x3f0   :  { %3629 = vsyncpa [#allocation3], 1 }

</bundles_post_ra>
